<compile_context>
chip_gen: v5e
topology: v5e:2x2
jax: 0.10.0
libtpu: 0.0.40
codegen_flags: <defaults>
</compile_context>

<pallas_src>
import jax
import jax.numpy as jnp
from jax.experimental import pallas as pl
from jax.experimental.pallas import tpu as pltpu


# ---------------------------------------------------------------------------
# Kernel
# ---------------------------------------------------------------------------
def _make_kernel(n_col_steps, tn, d):
    """Build the fused LN + Linear + residual kernel.

    n_col_steps == 1 : W fully resident, single matmul per row tile (no scratch).
    n_col_steps  > 1 : W column-tiled; normalized rows are computed once per row
                       tile (at j == 0) into a VMEM scratch and reused across j.
    """

    def _layernorm(x_ref, scal_ref):
        x = x_ref[...].astype(jnp.float32)                   # (TM, D) f32 stats
        alpha = scal_ref[0]
        beta = scal_ref[1]
        eps = scal_ref[2]
        s1 = jnp.sum(x, axis=-1, keepdims=True)
        s2 = jnp.sum(x * x, axis=-1, keepdims=True)
        mean = s1 * jnp.float32(1.0 / d)
        # torch-style unbiased variance; clamp >= 0 (one-pass form can cancel).
        var = jnp.maximum((s2 - s1 * mean) * jnp.float32(1.0 / (d - 1)), 0.0)
        std = jnp.sqrt(var)
        inv = pl.reciprocal(std + eps, approx=True)           # EUP slot, off VALU path
        return ((alpha * inv) * (x - mean) + beta).astype(jnp.bfloat16)

    if n_col_steps == 1:

        def kernel(scal_ref, x_ref, w_ref, b_ref, o_ref):
            y = _layernorm(x_ref, scal_ref)                   # (TM, D) bf16
            z = jnp.dot(y, w_ref[...], preferred_element_type=jnp.float32)
            z = z + b_ref[...].astype(jnp.float32)
            # dropout: eval-mode identity
            # TODO(synk): training-mode dropout would use pltpu.prng_seed/prng_random_bits.
            o_ref[...] = (x_ref[...].astype(jnp.float32) + z).astype(o_ref.dtype)

        return kernel

    def kernel(scal_ref, x_ref, w_ref, b_ref, o_ref, y_ref):
        j = pl.program_id(1)

        @pl.when(j == 0)
        def _():
            y_ref[...] = _layernorm(x_ref, scal_ref)          # cache normalized rows

        z = jnp.dot(y_ref[...], w_ref[...], preferred_element_type=jnp.float32)
        z = z + b_ref[...].astype(jnp.float32)

        col0 = pl.multiple_of(j * tn, tn)                     # lane-aligned dyn. slice
        x_cols = x_ref[:, pl.ds(col0, tn)].astype(jnp.float32)
        # dropout: eval-mode identity
        # TODO(synk): training-mode dropout would use pltpu.prng_seed/prng_random_bits.
        o_ref[...] = (x_cols + z).astype(o_ref.dtype)

    return kernel


# ---------------------------------------------------------------------------
# Sizing helpers
# ---------------------------------------------------------------------------
def _round_up(n, m):
    return ((n + m - 1) // m) * m


def _physical_vmem_bytes():
    try:
        info = pltpu.get_tpu_info()
        v = getattr(info, "vmem_capacity_bytes", None)
        if v:
            return int(v)
    except Exception:
        pass
    return 64 * 1024 * 1024  # conservative: v7x per-TensorCore


def _pick_tn(d):
    """Column tile for W.  Keep W fully resident while D*D*2 bytes is small;
    otherwise pick the largest multiple-of-128 divisor of D with a <=8 MiB block."""
    if d % 128 != 0 or d * d * 2 <= 16 * 1024 * 1024:
        return d
    cap = 8 * 1024 * 1024
    best = 128
    for tn in range(128, d, 128):
        if d % tn == 0 and d * tn * 2 <= cap:
            best = tn
    return best


def _vmem_budget(tm, tn, d, x_bytes, out_bytes, n_col_steps):
    """Rough VMEM requirement for one pipelined step (double buffers + scratch)."""
    b = 2 * tm * d * x_bytes                                   # x, double-buffered
    b += 2 * tm * tn * out_bytes                               # out, double-buffered
    w_bufs = 1 if n_col_steps == 1 else 2
    b += w_bufs * d * tn * 2                                   # bf16 W block(s)
    b += w_bufs * tn * 4                                       # f32 bias block(s)
    if n_col_steps > 1:
        b += tm * d * 2                                        # bf16 y scratch
    b += 3 * tm * max(d, tn) * 4                               # in-kernel f32 temporaries
    return int(b * 1.25) + (1 << 20)                           # ~25% headroom


# ---------------------------------------------------------------------------
# Wrapper
# ---------------------------------------------------------------------------
def residual_connection(x, w, b, *, alpha=1.0, ln_bias=0.0, eps=1e-6, tm=512):
    """x: (B, S, D); w: (D, D); b: (D,). Returns x + Linear(LayerNorm(x)) (eval dropout)."""
    B, S, D = x.shape
    N = B * S
    x_bytes = jnp.dtype(x.dtype).itemsize
    out_bytes = x_bytes

    tn = _pick_tn(D)
    n_col = D // tn

    # Row tile: multiple of 8, as large as the budget allows, padded-N friendly.
    tm_eff = min(_round_up(tm, 8), _round_up(N, 8))
    if _round_up(N, tm_eff) // tm_eff < 2 and N >= 16:
        # give the grid >=2 row steps so v7x's two TensorCores both get work
        tm_eff = _round_up((N + 1) // 2, 8)

    phys = _physical_vmem_bytes()
    cap = int(phys * 0.85)
    while _vmem_budget(tm_eff, tn, D, x_bytes, out_bytes, n_col) > cap and tm_eff > 64:
        tm_eff = max(64, _round_up(tm_eff // 2, 8))

    N_pad = _round_up(N, tm_eff)
    x2 = x.reshape(N, D)
    if N_pad != N:
        x2 = jnp.pad(x2, ((0, N_pad - N), (0, 0)))             # pad rows, sliced off below

    scal = jnp.array([alpha, ln_bias, eps], dtype=jnp.float32)
    w_bf16 = w.astype(jnp.bfloat16)                             # full-rate MXU, half VMEM
    b2 = b.reshape(1, D).astype(jnp.float32)

    kernel = _make_kernel(n_col, tn, D)

    if n_col == 1:
        # constant block index -> single VMEM buffer for W and bias
        w_spec = pl.BlockSpec((D, tn), lambda i, j: (0, 0), pipeline_mode=pl.Buffered(1))
        b_spec = pl.BlockSpec((1, tn), lambda i, j: (0, 0), pipeline_mode=pl.Buffered(1))
        scratch = ()
    else:
        w_spec = pl.BlockSpec((D, tn), lambda i, j: (0, j))
        b_spec = pl.BlockSpec((1, tn), lambda i, j: (0, j))
        scratch = (pltpu.VMEM((tm_eff, D), jnp.bfloat16),)      # cached LayerNorm rows

    vmem_limit = min(
        max(_vmem_budget(tm_eff, tn, D, x_bytes, out_bytes, n_col), 16 * 1024 * 1024),
        cap,
    )

    cost = pl.CostEstimate(
        flops=2 * N_pad * D * D + 8 * N_pad * D,
        transcendentals=2 * N_pad,
        bytes_accessed=N_pad * D * (x_bytes + out_bytes) + D * D * 2 + D * 4,
    )

    out = pl.pallas_call(
        kernel,
        out_shape=jax.ShapeDtypeStruct((N_pad, D), x.dtype),
        grid=(N_pad // tm_eff, n_col),
        in_specs=[
            pl.BlockSpec(memory_space=pltpu.MemorySpace.SMEM),  # [alpha, bias, eps]
            pl.BlockSpec((tm_eff, D), lambda i, j: (i, 0)),     # x rows (native dtype)
            w_spec,
            b_spec,
        ],
        out_specs=pl.BlockSpec((tm_eff, tn), lambda i, j: (i, j)),
        scratch_shapes=scratch,
        compiler_params=pltpu.CompilerParams(
            dimension_semantics=("parallel", "arbitrary"),
            vmem_limit_bytes=vmem_limit,
        ),
        cost_estimate=cost,
    )(scal, x2, w_bf16, b2)

    if N_pad != N:
        out = out[:N]
    return out.reshape(B, S, D)


# ---------------------------------------------------------------------------
# Reference + test
# ---------------------------------------------------------------------------
def _reference(x, w, b, *, alpha=1.0, ln_bias=0.0, eps=1e-6):
    xf = x.astype(jnp.float32)
    mean = jnp.mean(xf, axis=-1, keepdims=True)
    diff = xf - mean
    var = jnp.sum(diff * diff, axis=-1, keepdims=True) / (x.shape[-1] - 1)
    std = jnp.sqrt(var)
    y = alpha * diff / (std + eps) + ln_bias
    # match the kernel's bf16 MXU inputs so the comparison is tight
    z = jnp.dot(y.astype(jnp.bfloat16), w.astype(jnp.bfloat16),
                preferred_element_type=jnp.float32) + b.astype(jnp.float32)
    return (xf + z).astype(x.dtype)


if __name__ == "__main__":
    key = jax.random.PRNGKey(0)
    kx, kw, kb = jax.random.split(key, 3)

    # Small but lane-dense shapes (D multiple of 128 -> unmasked full-lane stores).
    B, S, D = 2, 8, 128
    x = jax.random.normal(kx, (B, S, D), dtype=jnp.float32)
    w = jax.random.normal(kw, (D, D), dtype=jnp.float32) * 0.05   # sublayer = Linear(D, D)
    b = jax.random.normal(kb, (D,), dtype=jnp.float32) * 0.05

    out = residual_connection(x, w, b)
    out = jax.block_until_ready(out)

    ref = _reference(x, w, b)
    assert out.shape == (B, S, D)
    # tolerance covers approx EUP reciprocal + bf16 MXU rounding
    assert jnp.allclose(out, ref, atol=2e-2, rtol=2e-2), "mismatch vs reference"
    print("KERNEL_OK")
</pallas_src>

<mosaic_0001>
module attributes {stable_mosaic.version = 11 : i64} {
  func.func @kernel(%arg0: i32, %arg1: i32, %arg2: memref<3xf32, #tpu.memory_space<smem>>, %arg3: memref<8x128xf32, #tpu.memory_space<vmem>>, %arg4: memref<128x128xbf16, #tpu.memory_space<vmem>>, %arg5: memref<1x128xf32, #tpu.memory_space<vmem>>, %arg6: memref<8x128xf32, #tpu.memory_space<vmem>>) attributes {dimension_semantics = [#tpu.dimension_semantics<parallel>, #tpu.dimension_semantics<arbitrary>], iteration_bounds = array<i64: 2, 1>, scalar_prefetch = 0 : i64, scratch_operands = 0 : i64, tpu.core_type = #tpu.core_type<tc>, window_params = [{transform_indices = @transform_0, window_bounds = array<i64: 3>}, {transform_indices = @transform_1, window_bounds = array<i64: 8, 128>}, {pipeline_mode = #tpu.pipeline_mode<synchronous>, transform_indices = @transform_2, window_bounds = array<i64: 128, 128>}, {pipeline_mode = #tpu.pipeline_mode<synchronous>, transform_indices = @transform_3, window_bounds = array<i64: 1, 128>}, {transform_indices = @transform_4, window_bounds = array<i64: 8, 128>}]} {
    %c0 = arith.constant 0 : index
    %c0_0 = arith.constant 0 : index
    %0 = vector.load %arg3[%c0, %c0_0] : memref<8x128xf32, #tpu.memory_space<vmem>>, vector<8x128xf32>
    %c0_1 = arith.constant 0 : index
    %1 = memref.load %arg2[%c0_1] : memref<3xf32, #tpu.memory_space<smem>>
    %c1 = arith.constant 1 : index
    %2 = memref.load %arg2[%c1] : memref<3xf32, #tpu.memory_space<smem>>
    %c2 = arith.constant 2 : index
    %3 = memref.load %arg2[%c2] : memref<3xf32, #tpu.memory_space<smem>>
    %cst = arith.constant dense<0.000000e+00> : vector<8xf32>
    %4 = vector.multi_reduction <add>, %0, %cst [1] : vector<8x128xf32> to vector<8xf32>
    %5 = vector.shape_cast %4 : vector<8xf32> to vector<8x1xf32>
    %6 = arith.mulf %0, %0 : vector<8x128xf32>
    %cst_2 = arith.constant dense<0.000000e+00> : vector<8xf32>
    %7 = vector.multi_reduction <add>, %6, %cst_2 [1] : vector<8x128xf32> to vector<8xf32>
    %8 = vector.shape_cast %7 : vector<8xf32> to vector<8x1xf32>
    %cst_3 = arith.constant 7.812500e-03 : f32
    %9 = vector.broadcast %cst_3 : f32 to vector<8x1xf32>
    %10 = arith.mulf %5, %9 : vector<8x1xf32>
    %11 = arith.mulf %5, %10 : vector<8x1xf32>
    %12 = arith.subf %8, %11 : vector<8x1xf32>
    %cst_4 = arith.constant 0.00787401571 : f32
    %13 = vector.broadcast %cst_4 : f32 to vector<8x1xf32>
    %14 = arith.mulf %12, %13 : vector<8x1xf32>
    %cst_5 = arith.constant 0.000000e+00 : f32
    %15 = vector.broadcast %cst_5 : f32 to vector<8x1xf32>
    %16 = arith.maximumf %14, %15 : vector<8x1xf32>
    %17 = math.sqrt %16 : vector<8x1xf32>
    %18 = vector.broadcast %3 : f32 to vector<8x1xf32>
    %19 = arith.addf %17, %18 : vector<8x1xf32>
    %20 = tpu.reciprocal %19 {approx = true} : vector<8x1xf32> -> vector<8x1xf32>
    %21 = vector.broadcast %1 : f32 to vector<8x1xf32>
    %22 = arith.mulf %21, %20 : vector<8x1xf32>
    %23 = vector.broadcast %10 : vector<8x1xf32> to vector<8x128xf32>
    %24 = arith.subf %0, %23 : vector<8x128xf32>
    %25 = vector.broadcast %22 : vector<8x1xf32> to vector<8x128xf32>
    %26 = arith.mulf %25, %24 : vector<8x128xf32>
    %27 = vector.broadcast %2 : f32 to vector<8x128xf32>
    %28 = arith.addf %26, %27 : vector<8x128xf32>
    %29 = arith.truncf %28 : vector<8x128xf32> to vector<8x128xbf16>
    %c0_6 = arith.constant 0 : index
    %c0_7 = arith.constant 0 : index
    %30 = vector.load %arg4[%c0_6, %c0_7] : memref<128x128xbf16, #tpu.memory_space<vmem>>, vector<128x128xbf16>
    %cst_8 = arith.constant dense<0.000000e+00> : vector<8x128xf32>
    %31 = tpu.matmul %29, %30, %cst_8 {dimension_numbers = #tpu.dot_dimension_numbers<[1], [0], [0], [1], [0, 0, 1, 1], [], []>} : vector<8x128xbf16>, vector<128x128xbf16>, vector<8x128xf32> -> vector<8x128xf32>
    %c0_9 = arith.constant 0 : index
    %c0_10 = arith.constant 0 : index
    %32 = vector.load %arg5[%c0_9, %c0_10] : memref<1x128xf32, #tpu.memory_space<vmem>>, vector<1x128xf32>
    %33 = vector.broadcast %32 : vector<1x128xf32> to vector<8x128xf32>
    %34 = arith.addf %31, %33 : vector<8x128xf32>
    %c0_11 = arith.constant 0 : index
    %c0_12 = arith.constant 0 : index
    %35 = vector.load %arg3[%c0_11, %c0_12] : memref<8x128xf32, #tpu.memory_space<vmem>>, vector<8x128xf32>
    %36 = arith.addf %35, %34 : vector<8x128xf32>
    %c0_13 = arith.constant 0 : index
    %c0_14 = arith.constant 0 : index
    %37 = vector.load %arg6[%c0_13, %c0_14] : memref<8x128xf32, #tpu.memory_space<vmem>>, vector<8x128xf32>
    tpu.vector_store %arg6[%c0_13, %c0_14], %36 {strides = array<i32>} : memref<8x128xf32, #tpu.memory_space<vmem>>, vector<8x128xf32>,
    return
  }
  func.func @transform_0(%arg0: i32, %arg1: i32) -> i32 {
    %c0_i32 = arith.constant 0 : i32
    %c0_i32_0 = arith.constant 0 : i32
    return %c0_i32 : i32
  }
  func.func @transform_1(%arg0: i32, %arg1: i32) -> (i32, i32) {
    %c0_i32 = arith.constant 0 : i32
    %c0_i32_0 = arith.constant 0 : i32
    return %arg0, %c0_i32 : i32, i32
  }
  func.func @transform_2(%arg0: i32, %arg1: i32) -> (i32, i32) {
    %c0_i32 = arith.constant 0 : i32
    %c0_i32_0 = arith.constant 0 : i32
    %c0_i32_1 = arith.constant 0 : i32
    return %c0_i32, %c0_i32_0 : i32, i32
  }
  func.func @transform_3(%arg0: i32, %arg1: i32) -> (i32, i32) {
    %c0_i32 = arith.constant 0 : i32
    %c0_i32_0 = arith.constant 0 : i32
    %c0_i32_1 = arith.constant 0 : i32
    return %c0_i32, %c0_i32_0 : i32, i32
  }
  func.func @transform_4(%arg0: i32, %arg1: i32) -> (i32, i32) {
    %c0_i32 = arith.constant 0 : i32
    return %arg0, %arg1 : i32, i32
  }
}

</mosaic_0001>

<bundles_post_ra>
// kernel: tpu_custom_call.1
= control target key start
LH: loop header
LB: loop body
LE: loop exit
PB: predicated region body
PF: predicated region fallthrough
CT: control target
= control target key end

     0   :  { %9 = vsyncpa [#allocation5], 0  ;;  %s1002_s0 = inlined_call_operand.hbm [shape: f32[3], index: 0, kind: input, shape index: {}]   ;;  %s1003_s1 = inlined_call_operand.hbm [shape: f32[16,128], index: 1, kind: input, shape index: {}]   ;;  %s1004_s2 = inlined_call_operand.hbm [shape: bf16[128,128], index: 2, kind: input, shape index: {}]   ;;  %s1005_s3 = inlined_call_operand.vmem [shape: f32[1,128], index: 3, kind: input, shape index: {}]   ;;  %s1006_s4 = inlined_call_operand.hbm [shape: f32[16,128], index: 4, kind: output, shape index: {}]  }
   0x1   :  { %10 = vsyncpa [#allocation3], 0 }
   0x2   :  { %12 = vsyncpa [#allocation3 + $0x1], 0 }
   0x3   :  { %13 = vsyncpa [#allocation8], 0 }
   0x4   :  { %14 = vsyncpa [#allocation4], 0 }
   0x5   :  { %16 = vsyncpa [#allocation4 + $0x1], 0  ;;  %s842_s15 = smov 0   ;;  %s844_s16 = smov 0  }
   0x6   :  { %s846_s17 = smov 0   ;;  %s848_s18 = smov 0  }
   0x7   :  { %s850_s19 = smov 0   ;;  %s852_s20 = smov 0  }
   0x8 LB: > { %s497_s21 = sadd.s32 4294967295, %s811_s20   ;;  %s498_s22 = sadd.s32 4294967294, %s811_s20   ;;  %s811_s20 = sphi %s852_s20, %s22_s20   ;;  %s807_s19 = sphi %s850_s19, %s1016_s19   ;;  %s803_s18 = sphi %s848_s18, %s1015_s18   ;;  %s799_s17 = sphi %s846_s17, %s1014_s17   ;;  %s795_s16 = sphi %s844_s16, %s1013_s16   ;;  %s791_s15 = sphi %s842_s15, %s1012_s15  }
   0x9   : > { %p75_p0 = scmp.ne.s32.totalorder %s795_s16, %s791_s15  ;;  %p876_p1 = scmp.eq.s32.totalorder %s497_s21, 0 }
   0xa   : > { %p149_p2 = scmp.eq.s32.totalorder %s498_s22, 1  ;;  %p499_p4 = scmp.ge.s32.totalorder %s811_s20, 1 }
   0xb   : > { %p882_p3 = por %p876_p1, %p75_p0  ;;  %p156_p6 = scmp.lt.s32.totalorder %s811_s20, 3 }
   0xc   : > { %p887_p5 = por %p149_p2, %p75_p0  ;;  %s168_s28 = sshll.u32 %s1002_s0, 4  ;;  %s169_s28 = int_to_ptr.hbm [resolvable:$true] %s168_s28 }
   0xd   : > { %p895_p7 = pnand %p499_p4, %p156_p6  ;;  %p502_p8 = scmp.ge.s32.totalorder %s811_s20, 2 }
   0xe   : > { %s177_s6 = sshll.u32 %s1004_s2, 4  ;;  %s813_s7 = smov [#allocation7]   ;;  %s178_s6 = int_to_ptr.hbm [resolvable:$true] %s177_s6 }
   0xf   : > { %p568_p9 = pneg %p895_p7  ;;  %s179_s8 = sshll.u32 %s813_s7, 4  ;;  %s180_s8 = int_to_ptr.vmem [resolvable:$true] %s179_s8 }
  0x10   : > { %s814_s9 = smov [#allocation2]   ;;  %s815_s10 = smov 64  }
  0x11   : > { %p569_p10 = pnand %p568_p9, %p876_p1  ;;  %s816_s11 = smov 4  }
  0x12   : > { %p143_p11 = scmp.eq.s32.totalorder %s497_s21, 1  ;;  %s34_s12 = sadd.s32 1, %s807_s19 }
  0x13   : > { %571 = dma.hbm_to_smem (!%p569_p10), %s169_s28, 16, %s814_s9, [#allocation5]  }
  0x14   : > { %574 = dma.hbm_to_vmem [thread:$0]  (!%p569_p10), %s178_s6, 1024, %s180_s8, [#allocation8], %s815_s10, %s815_s10, %s816_s11  }
  0x15   : > { %p36_p12 = scmp.ge.s32.totalorder %s34_s12, 2  ;;  %s62_s13 = sadd.s32 1, %s799_s17 }
  0x16   : > { %p69_p13 = scmp.ne.s32.totalorder %s799_s17, %s795_s16  ;;  %p70_p0 = scmp.eq.s32.totalorder %s811_s20, 0 }
  0x17   : > { %s1018_s12 = smov (%p36_p12, %s34_s12), 0  ;;  %p585_p4 = scmp.lt.s32.totalorder %s811_s20, 2 }
  0x18   : > { %p914_p2 = por %p143_p11, %p69_p13  ;;  %s59_s22 = ssub.s32 %s807_s19, %s1018_s12 }
  0x19   : > { %s196_s26 = sand.u32 1, %s799_s17   ;;  %p60_p6 = scmp.eq.s32.totalorder %s59_s22, 0 }
  0x1a   : > { %p71_p9 = por %p70_p0, %p69_p13  ;;  %s503_s27 = sshll.u32 %s196_s26, 3 }
  0x1b   : > { %s504_s21 = sshll.u32 %s807_s19, 3  ;;  %s200_s8 = scalar_lea.vmem [#allocation6], %s503_s27 }
  0x1c   : > { %s924_s28 = scalar_select %p60_p6, %s799_s17, %s62_s13  }
  0x1d   : > { %s204_s6 = scalar_lea.hbm %s1003_s1, %s504_s21  ;;  %s208_s9 = sshll.u32 %s200_s8, 4  ;;  %s209_s9 = int_to_ptr.vmem [resolvable:$true] %s208_s9 }
  0x1e   : > { %s206_s7 = sshll.u32 %s204_s6, 4  ;;  %p576_p10 = pnand %p585_p4, %p71_p9  ;;  %s207_s7 = int_to_ptr.hbm [resolvable:$true] %s206_s7 }
  0x1f   : > { %s197_s10 = scalar_lea.sflag [#allocation3], %s196_s26  ;;  %217 = sbr.rel (%p895_p7) target bundleno = 348 (0x15c), region = 36 }
  0x20   : > { %578 = dma.hbm_to_vmem [thread:$0]  (!%p576_p10), %s207_s7, 128, %s209_s9, %s197_s10  }
  0x24   : > { %774 = dma.done.wait (%p876_p1), [#allocation5], 16  }
  0x25   : > { %776 = vsyncadd (%p876_p1), [#allocation5], 4294967280  ;;  %s938_s11 = sand.u32 1, %s795_s16  }
  0x26   : > { %s507_s13 = sshll.u32 %s938_s11, 3  ;;  %s225_s22 = scalar_lea.sflag [#allocation3], %s938_s11 }
  0x27   : > { %s228_s26 = scalar_lea.vmem [#allocation6], %s507_s13 }
  0x28   : > { %778 = dma.done.wait (%p882_p3), %s225_s22, 128  }
  0x29   : > { %780 = vsyncadd (%p882_p3), %s225_s22, 4294967168 }
  0x2a   : > { %782 = dma.done.wait (%p876_p1), [#allocation8], 1024  }
  0x2b   : > { %784 = vsyncadd (%p876_p1), [#allocation8], 4294966272 }
  0x2c   : > { %239 = sfence }
  0x2d   : > { %v952_v0 = vld [vmem:[%s228_s26] sm:$0xff]  ;;  %v553_v4 = vld [vmem:[#allocation7 + $0x28] sm:$0xff]  ;;  %v552_v5 = vld [vmem:[#allocation7 + $0x20] sm:$0xff]  ;;  %s511_s23 = sld [smem:[#allocation2 + $0x2]]  ;;  %s545_s27 = sshll.u32 %s803_s18, 3 }
  0x2e   : > { %264 = vadd.xlane.f32.xlu0 %v952_v0  ;;  %v266_v1 = vmul.f32 %v952_v0, %v952_v0  ;;  %v555_v2 = vld [vmem:[#allocation7 + $0x38] sm:$0xff]  ;;  %v554_v3 = vld [vmem:[#allocation7 + $0x30] sm:$0xff]  ;;  %v549_v13 = vld [vmem:[#allocation7 + $0x8] sm:$0xff]  ;;  %s261_s24 = sld [smem:[#allocation2]]  ;;  %s391_s7 = scalar_lea.hbm %s1006_s4, %s545_s27 }
  0x2f   : > { %364 = vmatpush.bf16.msra.mxu0 %v555_v2  ;;  %v551_v7 = vld [vmem:[#allocation7 + $0x18] sm:$0xff]  ;;  %v550_v9 = vld [vmem:[#allocation7 + $0x10] sm:$0xff]  ;;  %v548_v16 = vld [vmem:[#allocation7] sm:$0xff]  ;;  %s510_s29 = sld [smem:[#allocation2 + $0x1]]  ;;  %s259_s8 = scalar_lea.vmem [#allocation9], %s507_s13 }
  0x30   : > { %v641_v37 = vld [vmem:[%s1005_s3] ss:$0 sm:$0xff]  ;;  %s393_s9 = sshll.u32 %s259_s8, 4  ;;  %s395_s10 = sshll.u32 %s391_s7, 4  ;;  %s394_s9 = int_to_ptr.vmem [resolvable:$true] %s393_s9  ;;  %s396_s10 = int_to_ptr.hbm [resolvable:$true] %s395_s10 }
  0x31   : > { %s380_s18 = scalar_lea.sflag [#allocation4], %s938_s11  ;;  %s735_s22 = sshra.s32 %s396_s10, 4  ;;  %s736_s22 = int_to_ptr.hbm [resolvable:$true] %s735_s22 }
  0x32   : > { %s737_s26 = scalar_lea.hbm %s736_s22, 8  ;;  %s741_s13 = scalar_lea.hbm %s1006_s4, 16 }
  0x33   : > { %365 = vmatpush.bf16.msra.mxu0 %v554_v3  ;;  %v286_v25 = vstv %s511_s23  ;;  %p738_p1 = scmp.ne.s32.totalorder %s736_s22, %s737_s26  ;;  %p742_p11 = scmp.lt.s32.totalorder %s736_s22, %s1006_s4 }
  0x34   : > { %v289_v29 = vstv %s261_s24  ;;  %p743_p12 = scmp.lt.s32.totalorder %s741_s13, %s737_s26 }
  0x35   : > { %v293_v33 = vstv %s510_s29  ;;  %p739_p3 = pnand %p738_p1, %p914_p2 }
  0x36   : > { %267 = vadd.xlane.f32.xlu0 %v266_v1  ;;  %p744_p13 = por %p743_p12, %p742_p11 }
  0x37   : > { %366 = vmatpush.bf16.msra.mxu0 %v553_v4  ;;  %p740_p7 = pneg %p739_p3 }
  0x39   : > { %p745_p0 = pnand %p744_p13, %p740_p7 }
  0x3b   : > { %367 = vmatpush.bf16.msra.mxu0 %v552_v5 }
  0x3f   : > { %368 = vmatpush.bf16.msra.mxu0 %v551_v7 }
  0x43   : > { %369 = vmatpush.bf16.msra.mxu0 %v550_v9 }
  0x47   : > { %370 = vmatpush.bf16.msra.mxu0 %v549_v13 }
  0x4b   : > { %371 = vmatpush.bf16.msra.mxu0 %v548_v16 }
  0xa1   : > { %v265_v6 = vpop.xlane.xlu0 %264 }
  0xa2   : > { %v269_v8 = vmul.f32 0.0078125, %v265_v6 }
  0xa4   : > { %v270_v10 = vmul.f32 %v269_v8, %v265_v6  ;;  %v291_v31 = vsub.f32 %v952_v0, %v269_v8 }
  0xa9   : > { %v268_v11 = vpop.xlane.xlu0 %267 }
  0xaa   : > { %v271_v12 = vsub.f32 %v268_v11, %v270_v10 }
  0xac   : > { %v272_v14 = vmul.f32 0.007874016, %v271_v12 }
  0xae   : > { %v273_v15 = vmax.f32 %v272_v14, 0.0 }
  0xb0   : > { %642 = vrsqrt.f32 %v273_v15  ;;  %vm281_vm0 = vcmp.eq.f32.partialorder %v273_v15, inf  ;;  %v284_v24 = vand.u32 2147483648, %v273_v15  ;;  %vm283_vm1 = vcmp.eq.f32.partialorder %v273_v15, 0.0 }
  0xb6   : > { %v643_v17 = vpop.eup %642 }
  0xb7   : > { %v275_v18 = vmul.f32 %v643_v17, %v273_v15 }
  0xb9   : > { %v276_v19 = vmul.f32 %v643_v17, %v275_v18 }
  0xbb   : > { %v277_v20 = vmul.f32 0.5, %v276_v19 }
  0xbd   : > { %v278_v21 = vsub.f32 1.5, %v277_v20 }
  0xbf   : > { %v279_v22 = vmul.f32 %v643_v17, %v278_v21 }
  0xc1   : > { %v280_v23 = vmul.f32 %v279_v22, %v273_v15 }
  0xc3   : > { %v282_v26 = vsel %vm281_vm0, %v273_v15, %v280_v23 }
  0xc4   : > { %v285_v27 = vsel %vm283_vm1, %v284_v24, %v282_v26 }
  0xc5   : > { %v287_v28 = vadd.f32 %v286_v25, %v285_v27 }
  0xc7   : > { %644 = vrcp.f32 %v287_v28 }
  0xcd   : > { %v645_v30 = vpop.eup %644 }
  0xce   : > { %v290_v32 = vmul.f32 %v645_v30, %v289_v29 }
  0xd0   : > { %v292_v34 = vmul.f32 %v291_v31, %v290_v32 }
  0xd2   : > { %v294_v35 = vadd.f32 %v293_v33, %v292_v34 }
  0xd4   : > { %v295_v36 = vpack.c.bf16 %v294_v35, %v294_v35 }
  0xd6   : > { %372 = vmatmul.bf16.vlgmr.msra.gmra.mxu0 %v295_v36 }
 0x153   : > { %v373_v38 = vpop.f32.mrf.mxu0 }
 0x154   : > { %v374_v39 = vadd.f32 %v641_v37, %v373_v38 }
 0x156   : > { %v377_v40 = vadd.f32 %v374_v39, %v952_v0 }
 0x158   : > { %378 = vst [vmem:[%s259_s8] sm:$0xff] %v377_v40 }
 0x159   : > { %748 = shalt.err (!%p745_p0)
}
 0x15a   : > { %566 = dma.vmem_to_hbm [thread:$0]  (%p914_p2), %s394_s9, 128, %s396_s10, %s380_s18  }
 0x15b   : > { %v375_v41 = vpop.f32.mrf.mxu0 }
 0x15c PF: > { %s407_s11 = sand.u32 1, %s791_s15   ;;  %p580_p4 = pnand %p502_p8, %p887_p5 }
 0x15d   : > { %s408_s21 = scalar_lea.sflag [#allocation4], %s407_s11 }
 0x15e   : > { %p581_p6 = pneg %p580_p4 }
 0x160   : > { %786 = dma.done.wait (%p581_p6), %s408_s21, 128  }
 0x161   : > { %788 = vsyncadd (%p581_p6), %s408_s21, 4294967168  ;;  %s22_s20 = sadd.s32 1, %s811_s20   ;;  %s1012_s15 = smov %s795_s16 }
 0x162   : > { %p19_p9 = scmp.ge.s32.totalorder %s22_s20, 4   ;;  %s1013_s16 = smov %s799_s17 }
 0x163   : > { %s1014_s17 = smov %s924_s28  ;;  %s1015_s18 = smov %s807_s19 }
 0x164   : > { %s1016_s19 = smov %s1018_s12  ;;  %21 = sbr.rel (!%p19_p9) target bundleno = 8 (0x8), region = 90 }
 0x169   :  { %414 = vsyncpa [#allocation3], 1 }
 0x16a   :  { %416 = vsyncpa [#allocation3 + $0x1], 1 }
 0x16b   :  { %417 = vsyncpa [#allocation8], 1 }
 0x16c   :  { %418 = vsyncpa [#allocation4], 1 }
 0x16d   :  { %420 = vsyncpa [#allocation4 + $0x1], 1 }
 0x16e   :  { %421 = vsyncpa [#allocation5], 1 }
 0x16f   :  { %423 = vsyncpa [#allocation5 + $0x1], 1 }

</bundles_post_ra>
